<compile_context>
chip_gen: v6e
topology: v6e:2x2x1
jax: 0.10.0
libtpu: 0.0.40
codegen_flags: <defaults>
</compile_context>

<pallas_src>
import functools

import jax
import jax.numpy as jnp
from jax.experimental import pallas as pl
from jax.experimental.pallas import tpu as pltpu


def _round_up(n, m):
    return (n + m - 1) // m * m


def _num_tensorcores_per_device():
    """2 on v7x (2 TCs/chip), else 1.  Only used for default tile sizing."""
    try:
        kind = jax.devices()[0].device_kind.lower()
    except Exception:
        return 1
    return 2 if ("v7" in kind or "tpu7" in kind) else 1


def _softq_kernel(xa_ref, w1_ref, b1_ref, w2_ref, b2_ref, w3_ref, b3_ref,
                  out_ref):
    cdt = w2_ref.dtype                          # MXU operand dtype (bf16 here)
    xa = xa_ref[...].astype(cdt)                # (TB, Kp) = x || a (zero-padded)

    # fc1 (+ ReLU): single merged dot over the padded concat dimension.
    h1 = jnp.dot(xa, w1_ref[...], preferred_element_type=jnp.float32) + b1_ref[...]
    h1 = jnp.maximum(h1, 0.0)

    # fc2 (+ ReLU)
    h2 = jnp.dot(h1.astype(cdt), w2_ref[...],
                 preferred_element_type=jnp.float32) + b2_ref[...]
    h2 = jnp.maximum(h2, 0.0)

    # fc3 (H -> 1): VPU multiply + XLU lane reduce; w3 is lane-dense (1, H) f32.
    q = jnp.sum(h2 * w3_ref[...], axis=1, keepdims=True)       # (TB, 1)
    q = q + b3_ref[pl.program_id(0), 0]                        # per-critic bias
    out_ref[...] = q.astype(out_ref.dtype)


@functools.partial(jax.jit, static_argnames=("block_b",))
def soft_q_forward_stacked(x, a, params, *, block_b=None):
    """Fused N-critic forward (params = stack_params(p1, ..., pN)).

    x: (B, obs) f32, a: (B, act) f32  ->  (N, B, 1) f32.
    """
    w1, b1, w2, b2, w3, b3 = params
    N, Kp, H = w1.shape
    B, obs = x.shape
    act = a.shape[1]
    K = obs + act

    # Batch tile: one grid step per TensorCore's share of the work (grid=1 on
    # v5e/v6e; >=2 batch tiles on v7x unless the critic axis already feeds both
    # TCs).  Capped at 256 rows to keep f32 intermediates out of spill range.
    if block_b is None:
        want_tiles = max(1, _num_tensorcores_per_device() // N)
        block_b = -(-B // want_tiles)
    tb = _round_up(max(1, min(block_b, B, 256)), 8)
    Bp = _round_up(B, tb)

    # Present x||a as a single lane-contiguous (Bp, Kp) slab -> fc1 is one dot.
    xa = jnp.concatenate([x, a], axis=1)
    if Bp != B or Kp != K:
        xa = jnp.pad(xa, ((0, Bp - B), (0, Kp - K)))

    flops = 2 * N * Bp * (Kp * H + H * H + H)
    bytes_accessed = int(
        xa.size * xa.dtype.itemsize
        + sum(int(p.size) * p.dtype.itemsize for p in (w1, b1, w2, b2, w3, b3))
        + N * Bp * 4)

    # Weights/biases: constant per-critic index map -> DMA'd once per critic,
    # VMEM-resident while batch tiles are pipelined.
    resident = lambda shape: pl.BlockSpec((None,) + shape, lambda c, i: (c, 0, 0))

    out = pl.pallas_call(
        _softq_kernel,
        out_shape=jax.ShapeDtypeStruct((N, Bp, 1), jnp.float32),
        grid=(N, Bp // tb),
        in_specs=[
            pl.BlockSpec((tb, Kp), lambda c, i: (i, 0)),        # x||a tile
            resident((Kp, H)),                                  # w1
            resident((1, H)),                                   # b1
            resident((H, H)),                                   # w2
            resident((1, H)),                                   # b2
            resident((1, H)),                                   # w3 (f32, lane-dense)
            pl.BlockSpec(memory_space=pltpu.MemorySpace.SMEM),  # b3 (N, 1) scalars
        ],
        out_specs=pl.BlockSpec((None, tb, 1), lambda c, i: (c, i, 0)),
        compiler_params=pltpu.CompilerParams(
            dimension_semantics=("parallel", "parallel"),
        ),
        cost_estimate=pl.CostEstimate(
            flops=flops, transcendentals=0, bytes_accessed=bytes_accessed),
    )(xa, w1, b1, w2, b2, w3, b3)
    return out[:, :B]


@functools.partial(jax.jit, static_argnames=("block_b",))
def soft_q_forward(x, a, params, *, block_b=None):
    """Single-critic forward (matches SoftQNetwork.forward): (B, obs),(B, act) -> (B, 1)."""
    return soft_q_forward_stacked(x, a, stack_params(params), block_b=block_b)[0]


def stack_params(*critic_params):
    """Stack per-critic param tuples along a leading axis for the fused call."""
    return tuple(jnp.stack(ps, axis=0) for ps in zip(*critic_params))


def init_params(key, obs_dim, act_dim, hidden=256, weight_dtype=jnp.bfloat16):
    """PyTorch-style U(-1/sqrt(fan_in), 1/sqrt(fan_in)) init, pre-laid-out for
    the kernel: one merged fc1 weight padded to (round_up(obs+act, 32), H),
    w3 stored lane-dense f32 (1, H), matmul weights cast to bf16 once here."""
    d_in = obs_dim + act_dim
    kp = _round_up(d_in, 32)
    ks = jax.random.split(key, 6)

    def u(k, shape, fan_in):
        bound = 1.0 / jnp.sqrt(jnp.float32(fan_in))
        return jax.random.uniform(k, shape, jnp.float32, -bound, bound)

    w1 = u(ks[0], (d_in, hidden), d_in)              # stored transposed: (in, out)
    b1 = u(ks[1], (1, hidden), d_in)
    w2 = u(ks[2], (hidden, hidden), hidden)
    b2 = u(ks[3], (1, hidden), hidden)
    w3 = u(ks[4], (hidden, 1), hidden)
    b3 = u(ks[5], (1,), hidden)

    w1p = jnp.zeros((kp, hidden), jnp.float32).at[:d_in].set(w1)  # zero pad rows
    wd = weight_dtype
    return (w1p.astype(wd),            # w1 merged, (Kp, H) bf16
            b1,                        # f32
            w2.astype(wd),             # (H, H) bf16
            b2,                        # f32
            w3.T.astype(jnp.float32),  # (1, H) lane-dense, kept f32
            b3)                        # f32 scalar (lives in SMEM)


def reference_forward(x, a, params):
    """Pure-JAX f32 reference using the same effective (stored) weights."""
    w1, b1, w2, b2, w3, b3 = [p.astype(jnp.float32) for p in params]
    xa = jnp.concatenate([x, a], axis=1)
    h1 = jnp.maximum(xa @ w1[: xa.shape[1]] + b1, 0.0)
    h2 = jnp.maximum(h1 @ w2 + b2, 0.0)
    return h2 @ w3.T + b3


if __name__ == "__main__":
    # HalfCheetah-like continuous-control dims; small SAC-style batch.
    batch, obs_dim, act_dim, hidden = 64, 17, 6, 256

    key = jax.random.PRNGKey(0)
    k_x, k_a, k_p1, k_p2 = jax.random.split(key, 4)
    x = jax.random.normal(k_x, (batch, obs_dim), jnp.float32)
    a = jax.random.normal(k_a, (batch, act_dim), jnp.float32)
    params_q1 = init_params(k_p1, obs_dim, act_dim, hidden)
    params_q2 = init_params(k_p2, obs_dim, act_dim, hidden)

    # Single critic: matches SoftQNetwork.forward.
    q1 = jax.block_until_ready(soft_q_forward(x, a, params_q1))
    # Fused SAC twin critics (qf1, qf2) in one pallas_call.
    q_twin = jax.block_until_ready(
        soft_q_forward_stacked(x, a, stack_params(params_q1, params_q2)))

    q1_ref = reference_forward(x, a, params_q1)
    q2_ref = reference_forward(x, a, params_q2)

    assert q1.shape == (batch, 1), q1.shape
    assert q_twin.shape == (2, batch, 1), q_twin.shape
    # bf16 MXU operands with f32 accumulation vs f32 reference -> loose tol.
    for got, ref in ((q1, q1_ref), (q_twin[0], q1_ref), (q_twin[1], q2_ref)):
        assert jnp.allclose(got, ref, atol=2e-2, rtol=2e-2), (
            float(jnp.max(jnp.abs(got - ref))))

    print("KERNEL_OK")
</pallas_src>

<mosaic_0001>
module attributes {stable_mosaic.version = 11 : i64} {
  func.func @_softq_kernel(%arg0: i32, %arg1: i32, %arg2: memref<64x32xf32, #tpu.memory_space<vmem>>, %arg3: memref<1x32x256xbf16, #tpu.memory_space<vmem>>, %arg4: memref<1x1x256xf32, #tpu.memory_space<vmem>>, %arg5: memref<1x256x256xbf16, #tpu.memory_space<vmem>>, %arg6: memref<1x1x256xf32, #tpu.memory_space<vmem>>, %arg7: memref<1x1x256xf32, #tpu.memory_space<vmem>>, %arg8: memref<1x1xf32, #tpu.memory_space<smem>>, %arg9: memref<1x64x1xf32, #tpu.memory_space<vmem>>) attributes {dimension_semantics = [#tpu.dimension_semantics<parallel>, #tpu.dimension_semantics<parallel>], iteration_bounds = array<i64: 1, 1>, scalar_prefetch = 0 : i64, scratch_operands = 0 : i64, tpu.core_type = #tpu.core_type<tc>, window_params = [{transform_indices = @transform_0, window_bounds = array<i64: 64, 32>}, {transform_indices = @transform_1, window_bounds = array<i64: 1, 32, 256>}, {transform_indices = @transform_2, window_bounds = array<i64: 1, 1, 256>}, {transform_indices = @transform_3, window_bounds = array<i64: 1, 256, 256>}, {transform_indices = @transform_4, window_bounds = array<i64: 1, 1, 256>}, {transform_indices = @transform_5, window_bounds = array<i64: 1, 1, 256>}, {transform_indices = @transform_6, window_bounds = array<i64: 1, 1>}, {transform_indices = @transform_7, window_bounds = array<i64: 1, 64, 1>}]} {
    %c0 = arith.constant 0 : index
    %c0_0 = arith.constant 0 : index
    %0 = vector.load %arg2[%c0, %c0_0] : memref<64x32xf32, #tpu.memory_space<vmem>>, vector<64x32xf32>
    %1 = arith.truncf %0 : vector<64x32xf32> to vector<64x32xbf16>
    %c0_1 = arith.constant 0 : index
    %c0_2 = arith.constant 0 : index
    %c0_3 = arith.constant 0 : index
    %2 = vector.load %arg3[%c0_1, %c0_2, %c0_3] : memref<1x32x256xbf16, #tpu.memory_space<vmem>>, vector<1x32x256xbf16>
    %3 = vector.shape_cast %2 : vector<1x32x256xbf16> to vector<32x256xbf16>
    %cst = arith.constant dense<0.000000e+00> : vector<64x256xf32>
    %4 = tpu.matmul %1, %3, %cst {dimension_numbers = #tpu.dot_dimension_numbers<[1], [0], [0], [1], [0, 0, 1, 1], [], []>} : vector<64x32xbf16>, vector<32x256xbf16>, vector<64x256xf32> -> vector<64x256xf32>
    %c0_4 = arith.constant 0 : index
    %c0_5 = arith.constant 0 : index
    %c0_6 = arith.constant 0 : index
    %5 = vector.load %arg4[%c0_4, %c0_5, %c0_6] : memref<1x1x256xf32, #tpu.memory_space<vmem>>, vector<1x1x256xf32>
    %6 = vector.shape_cast %5 : vector<1x1x256xf32> to vector<1x256xf32>
    %7 = vector.broadcast %6 : vector<1x256xf32> to vector<64x256xf32>
    %8 = arith.addf %4, %7 : vector<64x256xf32>
    %cst_7 = arith.constant 0.000000e+00 : f32
    %9 = vector.broadcast %cst_7 : f32 to vector<64x256xf32>
    %10 = arith.maximumf %8, %9 : vector<64x256xf32>
    %11 = arith.truncf %10 : vector<64x256xf32> to vector<64x256xbf16>
    %c0_8 = arith.constant 0 : index
    %c0_9 = arith.constant 0 : index
    %c0_10 = arith.constant 0 : index
    %12 = vector.load %arg5[%c0_8, %c0_9, %c0_10] : memref<1x256x256xbf16, #tpu.memory_space<vmem>>, vector<1x256x256xbf16>
    %13 = vector.shape_cast %12 : vector<1x256x256xbf16> to vector<256x256xbf16>
    %cst_11 = arith.constant dense<0.000000e+00> : vector<64x256xf32>
    %14 = tpu.matmul %11, %13, %cst_11 {dimension_numbers = #tpu.dot_dimension_numbers<[1], [0], [0], [1], [0, 0, 1, 1], [], []>} : vector<64x256xbf16>, vector<256x256xbf16>, vector<64x256xf32> -> vector<64x256xf32>
    %c0_12 = arith.constant 0 : index
    %c0_13 = arith.constant 0 : index
    %c0_14 = arith.constant 0 : index
    %15 = vector.load %arg6[%c0_12, %c0_13, %c0_14] : memref<1x1x256xf32, #tpu.memory_space<vmem>>, vector<1x1x256xf32>
    %16 = vector.shape_cast %15 : vector<1x1x256xf32> to vector<1x256xf32>
    %17 = vector.broadcast %16 : vector<1x256xf32> to vector<64x256xf32>
    %18 = arith.addf %14, %17 : vector<64x256xf32>
    %cst_15 = arith.constant 0.000000e+00 : f32
    %19 = vector.broadcast %cst_15 : f32 to vector<64x256xf32>
    %20 = arith.maximumf %18, %19 : vector<64x256xf32>
    %c0_16 = arith.constant 0 : index
    %c0_17 = arith.constant 0 : index
    %c0_18 = arith.constant 0 : index
    %21 = vector.load %arg7[%c0_16, %c0_17, %c0_18] : memref<1x1x256xf32, #tpu.memory_space<vmem>>, vector<1x1x256xf32>
    %22 = vector.shape_cast %21 : vector<1x1x256xf32> to vector<1x256xf32>
    %23 = vector.broadcast %22 : vector<1x256xf32> to vector<64x256xf32>
    %24 = arith.mulf %20, %23 : vector<64x256xf32>
    %cst_19 = arith.constant dense<0.000000e+00> : vector<64xf32>
    %25 = vector.multi_reduction <add>, %24, %cst_19 [1] : vector<64x256xf32> to vector<64xf32>
    %26 = vector.shape_cast %25 : vector<64xf32> to vector<64x1xf32>
    %27 = arith.index_cast %arg0 : i32 to index
    %c0_20 = arith.constant 0 : index
    %28 = memref.load %arg8[%27, %c0_20] : memref<1x1xf32, #tpu.memory_space<smem>>
    %29 = vector.broadcast %28 : f32 to vector<64x1xf32>
    %30 = arith.addf %26, %29 : vector<64x1xf32>
    %c0_21 = arith.constant 0 : index
    %c0_22 = arith.constant 0 : index
    %c0_23 = arith.constant 0 : index
    %31 = vector.load %arg9[%c0_21, %c0_22, %c0_23] : memref<1x64x1xf32, #tpu.memory_space<vmem>>, vector<1x64x1xf32>
    %32 = vector.shape_cast %31 : vector<1x64x1xf32> to vector<64x1xf32>
    %33 = vector.shape_cast %30 : vector<64x1xf32> to vector<1x64x1xf32>
    tpu.vector_store %arg9[%c0_21, %c0_22, %c0_23], %33 {strides = array<i32>} : memref<1x64x1xf32, #tpu.memory_space<vmem>>, vector<1x64x1xf32>,
    return
  }
  func.func @transform_0(%arg0: i32, %arg1: i32) -> (i32, i32) {
    %c0_i32 = arith.constant 0 : i32
    %c0_i32_0 = arith.constant 0 : i32
    return %arg1, %c0_i32 : i32, i32
  }
  func.func @transform_1(%arg0: i32, %arg1: i32) -> (i32, i32, i32) {
    %c0_i32 = arith.constant 0 : i32
    %c0_i32_0 = arith.constant 0 : i32
    %c0_i32_1 = arith.constant 0 : i32
    return %arg0, %c0_i32, %c0_i32_0 : i32, i32, i32
  }
  func.func @transform_2(%arg0: i32, %arg1: i32) -> (i32, i32, i32) {
    %c0_i32 = arith.constant 0 : i32
    %c0_i32_0 = arith.constant 0 : i32
    %c0_i32_1 = arith.constant 0 : i32
    return %arg0, %c0_i32, %c0_i32_0 : i32, i32, i32
  }
  func.func @transform_3(%arg0: i32, %arg1: i32) -> (i32, i32, i32) {
    %c0_i32 = arith.constant 0 : i32
    %c0_i32_0 = arith.constant 0 : i32
    %c0_i32_1 = arith.constant 0 : i32
    return %arg0, %c0_i32, %c0_i32_0 : i32, i32, i32
  }
  func.func @transform_4(%arg0: i32, %arg1: i32) -> (i32, i32, i32) {
    %c0_i32 = arith.constant 0 : i32
    %c0_i32_0 = arith.constant 0 : i32
    %c0_i32_1 = arith.constant 0 : i32
    return %arg0, %c0_i32, %c0_i32_0 : i32, i32, i32
  }
  func.func @transform_5(%arg0: i32, %arg1: i32) -> (i32, i32, i32) {
    %c0_i32 = arith.constant 0 : i32
    %c0_i32_0 = arith.constant 0 : i32
    %c0_i32_1 = arith.constant 0 : i32
    return %arg0, %c0_i32, %c0_i32_0 : i32, i32, i32
  }
  func.func @transform_6(%arg0: i32, %arg1: i32) -> (i32, i32) {
    %c0_i32 = arith.constant 0 : i32
    %c0_i32_0 = arith.constant 0 : i32
    %c0_i32_1 = arith.constant 0 : i32
    return %c0_i32, %c0_i32_0 : i32, i32
  }
  func.func @transform_7(%arg0: i32, %arg1: i32) -> (i32, i32, i32) {
    %c0_i32 = arith.constant 0 : i32
    %c0_i32_0 = arith.constant 0 : i32
    return %arg0, %arg1, %c0_i32 : i32, i32, i32
  }
}

</mosaic_0001>

<bundles_post_ra>
// kernel: soft_q_forward_stacked.1
= control target key start
LH: loop header
LB: loop body
LE: loop exit
PB: predicated region body
PF: predicated region fallthrough
CT: control target
= control target key end

     0   :  { %13 = vsyncpa [#allocation4], 0  ;;  %s722_s24 = smov [#allocation3]   ;;  %s987_s0 = inlined_call_operand.vmem [shape: f32[64,32], index: 0, kind: input, shape index: {}]   ;;  %s988_s1 = inlined_call_operand.hbm [shape: bf16[1,32,256], index: 1, kind: input, shape index: {}]   ;;  %s989_s2 = inlined_call_operand.vmem [shape: f32[1,1,256], index: 2, kind: input, shape index: {}]   ;;  %s990_s3 = inlined_call_operand.vmem [shape: bf16[1,256,256], index: 3, kind: input, shape index: {}]   ;;  %s991_s4 = inlined_call_operand.vmem [shape: f32[1,1,256], index: 4, kind: input, shape index: {}]   ;;  %s992_s5 = inlined_call_operand.vmem [shape: f32[1,1,256], index: 5, kind: input, shape index: {}]   ;;  %s993_s6 = inlined_call_operand.<no memory space> [shape: f32[1,1], index: 6, kind: input, shape index: {}]   ;;  %s994_s7 = inlined_call_operand.vmem [shape: f32[1,64,1], index: 7, kind: output, shape index: {}]  }
   0x1   :  { %s21_s25 = sshll.u32 %s722_s24, 4  ;;  %s22_s25 = int_to_ptr.vmem [resolvable:$true] %s21_s25 }
   0x2   :  { %s708_s26 = scalar_lea.vmem %s22_s25, 512  ;;  %p713_p1 = scmp.lt.s32.totalorder %s22_s25, %s22_s25 }
   0x3   :  { %p709_p0 = scmp.ne.s32.totalorder %s22_s25, %s708_s26  ;;  %p714_p2 = scmp.lt.s32.totalorder %s708_s26, %s708_s26 }
   0x5   :  { %p715_p3 = por %p714_p2, %p713_p1 }
   0x7   :  { %p716_p4 = pnand %p715_p3, %p709_p0 }
   0x9   :  { %719 = shalt.err (!%p716_p4)
}
   0xa   :  { %s723_s27 = smov 128   ;;  %s724_s28 = smov 8  }
   0xb   :  { %27 = dma.hbm_to_vmem [thread:$0]  %s988_s1, 512, %s22_s25, [#allocation4], %s723_s27, %s723_s27, %s724_s28  }
   0xc   :  { %720 = dma.done.wait [#allocation4], 512  }
   0xd   :  { %721 = vsyncadd [#allocation4], 4294966784  ;;  %v725_v0 = vmov 0   ;;  %v646_v1 = vld [vmem:[#allocation3 + $0x14] ss:$8 sps:$4 sm:$0xff]   ;;  %v42_v5 = vld [vmem:[%s987_s0] sm:$0xff]  ;;  %v60_v49 = vlaneseq }
   0xe   :  { %135 = vmatprep.mubr.bf16.mxu0 %v725_v0  ;;  %v648_v2 = vld [vmem:[#allocation3 + $0x10] ss:$8 sps:$4 sm:$0xff]   ;;  %115 = vmatprep.subr.bf16.mxu0 %v646_v1  ;;  %v649_v3 = vld [vmem:[#allocation3 + $0x4] ss:$8 sps:$4 sm:$0xff]   ;;  %v651_v4 = vld [vmem:[#allocation3] ss:$8 sps:$4 sm:$0xff]  }
   0xf   :  { %116 = vmatpush1.bf16.msra.mxu0 %v648_v2  ;;  %v43_v6 = vld [vmem:[%s987_s0 + $0x8] sm:$0xff]  ;;  %v654_v8 = vld [vmem:[%s990_s3 + $0x74] ss:$8 sps:$4 sm:$0xff]   ;;  %vm90_vm0 = vcmask 261120   ;;  %v652_v9 = vld [vmem:[%s990_s3 + $0x70] ss:$8 sps:$4 sm:$0xff]  }
  0x10   :  { %117 = vmatprep.subr.bf16.mxu0 %v649_v3  ;;  %v50_v7 = vpack.c.bf16 %v43_v6, %v42_v5  ;;  %v657_v10 = vld [vmem:[%s990_s3 + $0x64] ss:$8 sps:$4 sm:$0xff]   ;;  %610 = vmatprep.subr.bf16.mxu1 %v654_v8  ;;  %v44_v11 = vld [vmem:[%s987_s0 + $0x10] sm:$0xff]  ;;  %v45_v12 = vld [vmem:[%s987_s0 + $0x18] sm:$0xff]  ;;  %v61_v50 = vshrl.u32 %v60_v49, 7  ;;  %vm556_vm1 = vcmask 7168  }
  0x11   :  { %626 = vmatpush1.bf16.msra.mxu1 %v652_v9  ;;  %v655_v13 = vld [vmem:[%s990_s3 + $0x60] ss:$8 sps:$4 sm:$0xff]   ;;  %v660_v14 = vld [vmem:[%s990_s3 + $0x54] ss:$8 sps:$4 sm:$0xff]   ;;  %v51_v15 = vpack.c.bf16 %v45_v12, %v44_v11  ;;  %v658_v16 = vld [vmem:[%s990_s3 + $0x50] ss:$8 sps:$4 sm:$0xff]  }
  0x12   :  { %611 = vmatprep.subr.bf16.mxu1 %v657_v10  ;;  %v663_v17 = vld [vmem:[%s990_s3 + $0x44] ss:$8 sps:$4 sm:$0xff]   ;;  %v661_v20 = vld [vmem:[%s990_s3 + $0x40] ss:$8 sps:$4 sm:$0xff]   ;;  %v666_v21 = vld [vmem:[%s990_s3 + $0x34] ss:$8 sps:$4 sm:$0xff]  }
  0x13   :  { %118 = vmatpush1.bf16.msra.mxu0 %v651_v4  ;;  %v46_v18 = vld [vmem:[%s987_s0 + $0x20] sm:$0xff]  ;;  %v47_v19 = vld [vmem:[%s987_s0 + $0x28] sm:$0xff]  ;;  %v664_v23 = vld [vmem:[%s990_s3 + $0x30] ss:$8 sps:$4 sm:$0xff]   ;;  %v893_v51 = vsub.s32 1, %v61_v50  ;;  %v895_v52 = vsub.s32 0, %v61_v50 }
  0x14   :  { %404 = vmatprep.subr.bf16.mxu0 %v654_v8  ;;  %v52_v22 = vpack.c.bf16 %v47_v19, %v46_v18  ;;  %v669_v24 = vld [vmem:[%s990_s3 + $0x24] ss:$8 sps:$4 sm:$0xff]   ;;  %v48_v25 = vld [vmem:[%s987_s0 + $0x30] sm:$0xff]  ;;  %v49_v26 = vld [vmem:[%s987_s0 + $0x38] sm:$0xff] }
  0x15   :  { %627 = vmatpush1.bf16.msra.mxu1 %v655_v13  ;;  %v667_v27 = vld [vmem:[%s990_s3 + $0x20] ss:$8 sps:$4 sm:$0xff]   ;;  %v672_v28 = vld [vmem:[%s990_s3 + $0x14] ss:$8 sps:$4 sm:$0xff]   ;;  %v53_v29 = vpack.c.bf16 %v49_v26, %v48_v25  ;;  %v670_v30 = vld [vmem:[%s990_s3 + $0x10] ss:$8 sps:$4 sm:$0xff]  }
  0x16   :  { %574 = vmatmul.mubr.msk.bf16.vlgmr.msra.gmra.mxu0 %vm90_vm0, %v50_v7  ;;  %612 = vmatprep.subr.bf16.mxu1 %v660_v14  ;;  %v675_v31 = vld [vmem:[%s990_s3 + $0x4] ss:$8 sps:$4 sm:$0xff]   ;;  %v673_v32 = vld [vmem:[%s990_s3] ss:$8 sps:$4 sm:$0xff]   ;;  %v678_v33 = vld [vmem:[%s990_s3 + $0xf4] ss:$8 sps:$4 sm:$0xff]  }
  0x17   :  { %145 = vmatprep.mubr.bf16.mxu0 %v725_v0  ;;  %405 = vmatpush1.bf16.msra.mxu0 %v652_v9  ;;  %v676_v34 = vld [vmem:[%s990_s3 + $0xf0] ss:$8 sps:$4 sm:$0xff]   ;;  %v681_v35 = vld [vmem:[%s990_s3 + $0xe4] ss:$8 sps:$4 sm:$0xff]   ;;  %v679_v36 = vld [vmem:[%s990_s3 + $0xe0] ss:$8 sps:$4 sm:$0xff]  }
  0x18   :  { %406 = vmatprep.subr.bf16.mxu0 %v657_v10  ;;  %v684_v37 = vld [vmem:[%s990_s3 + $0xd4] ss:$8 sps:$4 sm:$0xff]   ;;  %v682_v38 = vld [vmem:[%s990_s3 + $0xd0] ss:$8 sps:$4 sm:$0xff]   ;;  %v687_v39 = vld [vmem:[%s990_s3 + $0xc4] ss:$8 sps:$4 sm:$0xff]  }
  0x19   :  { %628 = vmatpush1.bf16.msra.mxu1 %v658_v16  ;;  %v685_v40 = vld [vmem:[%s990_s3 + $0xc0] ss:$8 sps:$4 sm:$0xff]   ;;  %v690_v41 = vld [vmem:[%s990_s3 + $0xb4] ss:$8 sps:$4 sm:$0xff]   ;;  %v688_v42 = vld [vmem:[%s990_s3 + $0xb0] ss:$8 sps:$4 sm:$0xff]  }
  0x1a   :  { %613 = vmatprep.subr.bf16.mxu1 %v663_v17  ;;  %v693_v43 = vld [vmem:[%s990_s3 + $0xa4] ss:$8 sps:$4 sm:$0xff]   ;;  %v691_v44 = vld [vmem:[%s990_s3 + $0xa0] ss:$8 sps:$4 sm:$0xff]   ;;  %v696_v45 = vld [vmem:[%s990_s3 + $0x94] ss:$8 sps:$4 sm:$0xff]  }
  0x1b   :  { %407 = vmatpush1.bf16.msra.mxu0 %v655_v13  ;;  %v694_v46 = vld [vmem:[%s990_s3 + $0x90] ss:$8 sps:$4 sm:$0xff]   ;;  %v699_v47 = vld [vmem:[%s990_s3 + $0x84] ss:$8 sps:$4 sm:$0xff]   ;;  %v697_v48 = vld [vmem:[%s990_s3 + $0x80] ss:$8 sps:$4 sm:$0xff]  }
  0x1c   :  { %408 = vmatprep.subr.bf16.mxu0 %v660_v14  ;;  %v58_v53 = vld [vmem:[%s989_s2] sm:$0x3] }
  0x1d   :  { %629 = vmatpush1.bf16.msra.mxu1 %v661_v20  ;;  %v67_v55 = vrot.slane %v58_v53, %v893_v51  ;;  %v63_v56 = vrot.slane %v58_v53, %v895_v52 }
  0x1e   :  { %575 = vmatmul.mubr.msk.bf16.gmra.mxu0 %vm90_vm0, %v51_v15  ;;  %614 = vmatprep.subr.bf16.mxu1 %v666_v21 }
  0x1f   :  { %155 = vmatprep.mubr.bf16.mxu0 %v725_v0  ;;  %409 = vmatpush1.bf16.msra.mxu0 %v658_v16 }
  0x20   :  { %410 = vmatprep.subr.bf16.mxu0 %v663_v17 }
  0x21   :  { %630 = vmatpush1.bf16.msra.mxu1 %v664_v23 }
  0x22   :  { %615 = vmatprep.subr.bf16.mxu1 %v669_v24 }
  0x23   :  { %411 = vmatpush1.bf16.msra.mxu0 %v661_v20 }
  0x24   :  { %412 = vmatprep.subr.bf16.mxu0 %v666_v21 }
  0x25   :  { %631 = vmatpush1.bf16.msra.mxu1 %v667_v27 }
  0x26   :  { %576 = vmatmul.mubr.msk.bf16.gmra.mxu0 %vm90_vm0, %v52_v22  ;;  %616 = vmatprep.subr.bf16.mxu1 %v672_v28 }
  0x27   :  { %165 = vmatprep.mubr.bf16.mxu0 %v725_v0  ;;  %413 = vmatpush1.bf16.msra.mxu0 %v664_v23 }
  0x28   :  { %414 = vmatprep.subr.bf16.mxu0 %v669_v24 }
  0x29   :  { %632 = vmatpush1.bf16.msra.mxu1 %v670_v30 }
  0x2a   :  { %617 = vmatprep.subr.bf16.mxu1 %v675_v31 }
  0x2b   :  { %415 = vmatpush1.bf16.msra.mxu0 %v667_v27 }
  0x2c   :  { %416 = vmatprep.subr.bf16.mxu0 %v672_v28 }
  0x2d   :  { %633 = vmatpush1.bf16.msra.mxu1 %v673_v32 }
  0x2e   :  { %577 = vmatmul.mubr.msk.bf16.gmra.mxu0 %vm90_vm0, %v53_v29  ;;  %618 = vmatprep.subr.bf16.mxu1 %v678_v33 }
  0x2f   :  { %417 = vmatpush1.bf16.msra.mxu0 %v670_v30 }
  0x30   :  { %418 = vmatprep.subr.bf16.mxu0 %v675_v31 }
  0x31   :  { %634 = vmatpush2.bf16.msra.mxu1 %v676_v34 }
  0x32   :  { %619 = vmatprep.subr.bf16.mxu1 %v681_v35 }
  0x33   :  { %419 = vmatpush1.bf16.msra.mxu0 %v673_v32 }
  0x34   :  { %420 = vmatprep.subr.bf16.mxu0 %v678_v33 }
  0x35   :  { %635 = vmatpush2.bf16.msra.mxu1 %v679_v36 }
  0x36   :  { %620 = vmatprep.subr.bf16.mxu1 %v684_v37 }
  0x37   :  { %421 = vmatpush2.bf16.msra.mxu0 %v676_v34 }
  0x38   :  { %422 = vmatprep.subr.bf16.mxu0 %v681_v35 }
  0x39   :  { %636 = vmatpush2.bf16.msra.mxu1 %v682_v38 }
  0x3a   :  { %621 = vmatprep.subr.bf16.mxu1 %v687_v39 }
  0x3b   :  { %423 = vmatpush2.bf16.msra.mxu0 %v679_v36 }
  0x3c   :  { %424 = vmatprep.subr.bf16.mxu0 %v684_v37 }
  0x3d   :  { %637 = vmatpush2.bf16.msra.mxu1 %v685_v40 }
  0x3e   :  { %622 = vmatprep.subr.bf16.mxu1 %v690_v41 }
  0x3f   :  { %425 = vmatpush2.bf16.msra.mxu0 %v682_v38 }
  0x40   :  { %426 = vmatprep.subr.bf16.mxu0 %v687_v39 }
  0x41   :  { %638 = vmatpush2.bf16.msra.mxu1 %v688_v42 }
  0x42   :  { %623 = vmatprep.subr.bf16.mxu1 %v693_v43 }
  0x43   :  { %427 = vmatpush2.bf16.msra.mxu0 %v685_v40 }
  0x44   :  { %428 = vmatprep.subr.bf16.mxu0 %v690_v41 }
  0x45   :  { %639 = vmatpush2.bf16.msra.mxu1 %v691_v44 }
  0x46   :  { %624 = vmatprep.subr.bf16.mxu1 %v696_v45 }
  0x47   :  { %429 = vmatpush2.bf16.msra.mxu0 %v688_v42 }
  0x48   :  { %430 = vmatprep.subr.bf16.mxu0 %v693_v43 }
  0x49   :  { %640 = vmatpush2.bf16.msra.mxu1 %v694_v46 }
  0x4a   :  { %625 = vmatprep.subr.bf16.mxu1 %v699_v47 }
  0x4b   :  { %431 = vmatpush2.bf16.msra.mxu0 %v691_v44 }
  0x4c   :  { %432 = vmatprep.subr.bf16.mxu0 %v696_v45 }
  0x4d   :  { %641 = vmatpush2.bf16.msra.mxu1 %v697_v48 }
  0x4f   :  { %433 = vmatpush2.bf16.msra.mxu0 %v694_v46 }
  0x50   :  { %434 = vmatprep.subr.bf16.mxu0 %v699_v47 }
  0x53   :  { %435 = vmatpush2.bf16.msra.mxu0 %v697_v48  ;;  %v232_v48 = vld [vmem:[%s991_s4] sm:$0x3] }
  0x54   :  { %v906_v49 = vrot.slane %v232_v48, %v895_v52  ;;  %v909_v50 = vrot.slane %v232_v48, %v893_v51 }
  0xd6   :  { %v137_v54 = vpop.f32.mrf.mxu0 }
  0xd7   :  { %v138_v61 = vadd.f32 %v137_v54, %v63_v56  ;;  %v493_v54 = vld [vmem:[%s992_s5] sm:$0x3] }
  0xd8   :  { %v139_v57 = vpop.f32.mrf.mxu0 }
  0xd9   :  { %v140_v59 = vadd.f32 %v139_v57, %v67_v55  ;;  %v176_v4 = vmax.f32 %v138_v61, 0.0 }
  0xda   :  { %v141_v58 = vpop.f32.mrf.mxu0 }
  0xdb   :  { %v142_v60 = vadd.f32 %v141_v58, %v63_v56  ;;  %v177_v2 = vmax.f32 %v140_v59, 0.0  ;;  %v917_v59 = vrot.slane %v493_v54, %v895_v52 }
  0xdc   :  { %v143_v62 = vpop.f32.mrf.mxu0 }
  0xdd   :  { %v144_v63 = vadd.f32 %v143_v62, %v67_v55  ;;  %v178_v0 = vmax.f32 %v142_v60, 0.0  ;;  %v920_v60 = vrot.slane %v493_v54, %v893_v51 }
  0xde   :  { %v147_v1 = vpop.f32.mrf.mxu0 }
  0xdf   :  { %v179_v3 = vmax.f32 %v144_v63, 0.0  ;;  %v192_v7 = vpack.c.bf16 %v178_v0, %v176_v4  ;;  %v148_v11 = vadd.f32 %v147_v1, %v63_v56 }
  0xe0   :  { %v149_v5 = vpop.f32.mrf.mxu0 }
  0xe1   :  { %v193_v6 = vpack.c.bf16 %v179_v3, %v177_v2  ;;  %v150_v9 = vadd.f32 %v149_v5, %v67_v55  ;;  %v180_v18 = vmax.f32 %v148_v11, 0.0 }
  0xe2   :  { %v151_v8 = vpop.f32.mrf.mxu0 }
  0xe3   :  { %v152_v10 = vadd.f32 %v151_v8, %v63_v56  ;;  %436 = vmatprep.mubr.bf16.mxu0 %v193_v6  ;;  %v181_v16 = vmax.f32 %v150_v9, 0.0 }
  0xe4   :  { %v153_v12 = vpop.f32.mrf.mxu0  ;;  %437 = vmatmul.mubr.bf16.vlgmr.msra.gmra.mxu0 %v192_v7 }
  0xe5   :  { %v154_v13 = vadd.f32 %v153_v12, %v67_v55  ;;  %v182_v14 = vmax.f32 %v152_v10, 0.0 }
  0xe6   :  { %v157_v15 = vpop.f32.mrf.mxu0 }
  0xe7   :  { %v183_v17 = vmax.f32 %v154_v13, 0.0  ;;  %v194_v21 = vpack.c.bf16 %v182_v14, %v180_v18  ;;  %v158_v25 = vadd.f32 %v157_v15, %v63_v56 }
  0xe8   :  { %v159_v19 = vpop.f32.mrf.mxu0 }
  0xe9   :  { %v195_v20 = vpack.c.bf16 %v183_v17, %v181_v16  ;;  %v160_v23 = vadd.f32 %v159_v19, %v67_v55  ;;  %v184_v32 = vmax.f32 %v158_v25, 0.0 }
  0xea   :  { %v161_v22 = vpop.f32.mrf.mxu0 }
  0xeb   :  { %v162_v24 = vadd.f32 %v161_v22, %v63_v56  ;;  %446 = vmatprep.mubr.bf16.mxu1 %v195_v20  ;;  %v185_v30 = vmax.f32 %v160_v23, 0.0 }
  0xec   :  { %v163_v26 = vpop.f32.mrf.mxu0  ;;  %447 = vmatmul.mubr.bf16.vlgmr.msra.gmra.mxu1 %v194_v21 }
  0xed   :  { %v164_v27 = vadd.f32 %v163_v26, %v67_v55  ;;  %v186_v28 = vmax.f32 %v162_v24, 0.0 }
  0xee   :  { %v167_v29 = vpop.f32.mrf.mxu0 }
  0xef   :  { %v187_v31 = vmax.f32 %v164_v27, 0.0  ;;  %v196_v35 = vpack.c.bf16 %v186_v28, %v184_v32  ;;  %v168_v39 = vadd.f32 %v167_v29, %v63_v56 }
  0xf0   :  { %v169_v33 = vpop.f32.mrf.mxu0 }
  0xf1   :  { %v197_v34 = vpack.c.bf16 %v187_v31, %v185_v30  ;;  %v170_v37 = vadd.f32 %v169_v33, %v67_v55  ;;  %v188_v45 = vmax.f32 %v168_v39, 0.0 }
  0xf2   :  { %v171_v36 = vpop.f32.mrf.mxu0 }
  0xf3   :  { %v172_v38 = vadd.f32 %v171_v36, %v63_v56  ;;  %456 = vmatprep.mubr.bf16.mxu1 %v197_v34  ;;  %v189_v43 = vmax.f32 %v170_v37, 0.0 }
  0xf4   :  { %v173_v40 = vpop.f32.mrf.mxu0  ;;  %457 = vmatmul.mubr.bf16.gmra.mxu1 %v196_v35 }
  0xf5   :  { %v174_v41 = vadd.f32 %v173_v40, %v67_v55  ;;  %v190_v42 = vmax.f32 %v172_v38, 0.0 }
  0xf7   :  { %v191_v44 = vmax.f32 %v174_v41, 0.0  ;;  %v198_v47 = vpack.c.bf16 %v190_v42, %v188_v45 }
  0xf9   :  { %v199_v46 = vpack.c.bf16 %v191_v44, %v189_v43 }
  0xfb   :  { %466 = vmatprep.mubr.bf16.mxu1 %v199_v46 }
  0xfc   :  { %467 = vmatmul.mubr.bf16.gmra.mxu1 %v198_v47 }
 0x1a4   :  { %v438_v53 = vpop.f32.mrf.mxu0 }
 0x1a5   :  { %v439_v55 = vadd.f32 %v438_v53, %v906_v49 }
 0x1a6   :  { %v440_v56 = vpop.f32.mrf.mxu0 }
 0x1a7   :  { %v477_v57 = vmax.f32 %v439_v55, 0.0  ;;  %v441_v58 = vadd.f32 %v440_v56, %v909_v50 }
 0x1a8   :  { %v442_v61 = vpop.f32.mrf.mxu0 }
 0x1a9   :  { %v478_v62 = vmax.f32 %v441_v58, 0.0  ;;  %v443_v63 = vadd.f32 %v442_v61, %v906_v49  ;;  %v505_v3 = vmul.f32 %v917_v59, %v477_v57 }
 0x1aa   :  { %v444_v0 = vpop.f32.mrf.mxu0 }
 0x1ab   :  { %v479_v1 = vmax.f32 %v443_v63, 0.0  ;;  %v445_v2 = vadd.f32 %v444_v0, %v909_v50  ;;  %v506_v4 = vmul.f32 %v920_v60, %v478_v62 }
 0x1ac   :  { %v448_v5 = vpop.f32.mrf.mxu1 }
 0x1ad   :  { %v480_v6 = vmax.f32 %v445_v2, 0.0  ;;  %v449_v52 = vadd.f32 %v448_v5, %v906_v49  ;;  %v521_v7 = vadd.f32 %v506_v4, %v505_v3  ;;  %v507_v51 = vmul.f32 %v917_v59, %v479_v1 }
 0x1ae   :  { %v450_v8 = vpop.f32.mrf.mxu1 }
 0x1af   :  { %v508_v9 = vmul.f32 %v920_v60, %v480_v6  ;;  %v481_v10 = vmax.f32 %v449_v52, 0.0  ;;  %v451_v11 = vadd.f32 %v450_v8, %v909_v50  ;;  %522 = vadd.xlane.f32.xlu0 %v521_v7 }
 0x1b0   :  { %v452_v12 = vpop.f32.mrf.mxu1 }
 0x1b1   :  { %v482_v13 = vmax.f32 %v451_v11, 0.0  ;;  %v453_v14 = vadd.f32 %v452_v12, %v906_v49  ;;  %v524_v15 = vadd.f32 %v508_v9, %v507_v51  ;;  %v509_v19 = vmul.f32 %v917_v59, %v481_v10 }
 0x1b2   :  { %v454_v16 = vpop.f32.mrf.mxu1 }
 0x1b3   :  { %v483_v17 = vmax.f32 %v453_v14, 0.0  ;;  %v455_v18 = vadd.f32 %v454_v16, %v909_v50  ;;  %525 = vadd.xlane.f32.xlu0 %v524_v15  ;;  %v510_v20 = vmul.f32 %v920_v60, %v482_v13 }
 0x1b4   :  { %v458_v21 = vpop.f32.mrf.mxu1 }
 0x1b5   :  { %v484_v22 = vmax.f32 %v455_v18, 0.0  ;;  %v459_v23 = vadd.f32 %v458_v21, %v906_v49  ;;  %v527_v24 = vadd.f32 %v510_v20, %v509_v19  ;;  %v511_v26 = vmul.f32 %v917_v59, %v483_v17 }
 0x1b6   :  { %v460_v25 = vpop.f32.mrf.mxu1 }
 0x1b7   :  { %v512_v27 = vmul.f32 %v920_v60, %v484_v22  ;;  %v485_v28 = vmax.f32 %v459_v23, 0.0  ;;  %v461_v29 = vadd.f32 %v460_v25, %v909_v50  ;;  %528 = vadd.xlane.f32.xlu1 %v527_v24 }
 0x1b8   :  { %v462_v30 = vpop.f32.mrf.mxu1 }
 0x1b9   :  { %v486_v31 = vmax.f32 %v461_v29, 0.0  ;;  %v463_v32 = vadd.f32 %v462_v30, %v906_v49  ;;  %v530_v33 = vadd.f32 %v512_v27, %v511_v26  ;;  %v513_v35 = vmul.f32 %v917_v59, %v485_v28 }
 0x1ba   :  { %v464_v34 = vpop.f32.mrf.mxu1 }
 0x1bb   :  { %v514_v36 = vmul.f32 %v920_v60, %v486_v31  ;;  %v487_v37 = vmax.f32 %v463_v32, 0.0  ;;  %v465_v38 = vadd.f32 %v464_v34, %v909_v50  ;;  %531 = vadd.xlane.f32.xlu1 %v530_v33 }
 0x1bc   :  { %v468_v39 = vpop.f32.mrf.mxu1 }
 0x1bd   :  { %v488_v40 = vmax.f32 %v465_v38, 0.0  ;;  %v469_v41 = vadd.f32 %v468_v39, %v906_v49  ;;  %v533_v42 = vadd.f32 %v514_v36, %v513_v35  ;;  %v515_v44 = vmul.f32 %v917_v59, %v487_v37 }
 0x1be   :  { %v470_v43 = vpop.f32.mrf.mxu1 }
 0x1bf   :  { %v516_v45 = vmul.f32 %v920_v60, %v488_v40  ;;  %v489_v46 = vmax.f32 %v469_v41, 0.0  ;;  %v471_v47 = vadd.f32 %v470_v43, %v909_v50  ;;  %534 = vadd.xlane.f32.xlu0 %v533_v42 }
 0x1c0   :  { %v472_v48 = vpop.f32.mrf.mxu1 }
 0x1c1   :  { %v490_v53 = vmax.f32 %v471_v47, 0.0  ;;  %v473_v54 = vadd.f32 %v472_v48, %v906_v49  ;;  %v536_v55 = vadd.f32 %v516_v45, %v515_v44  ;;  %v517_v57 = vmul.f32 %v917_v59, %v489_v46 }
 0x1c2   :  { %v474_v56 = vpop.f32.mrf.mxu1  ;;  %v547_v49 = vstv %s993_s6 }
 0x1c3   :  { %v518_v58 = vmul.f32 %v920_v60, %v490_v53  ;;  %v491_v61 = vmax.f32 %v473_v54, 0.0  ;;  %v475_v62 = vadd.f32 %v474_v56, %v909_v50  ;;  %537 = vadd.xlane.f32.xlu1 %v536_v55 }
 0x1c5   :  { %v492_v63 = vmax.f32 %v475_v62, 0.0  ;;  %v539_v0 = vadd.f32 %v518_v58, %v517_v57  ;;  %v519_v1 = vmul.f32 %v917_v59, %v491_v61 }
 0x1c7   :  { %v520_v2 = vmul.f32 %v920_v60, %v492_v63  ;;  %540 = vadd.xlane.f32.xlu0 %v539_v0 }
 0x1c9   :  { %v542_v3 = vadd.f32 %v520_v2, %v519_v1 }
 0x1cb   :  { %543 = vadd.xlane.f32.xlu1 %v542_v3 }
 0x238   :  { %v523_v4 = vpop.xlane.xlu0 %522 }
 0x239   :  { %v548_v5 = vadd.f32 %v547_v49, %v523_v4 }
 0x23b   :  { %557 = vst.msk [vmem:[%s994_s7] sm:$0xff] %vm556_vm1, %v548_v5 }
 0x23c   :  { %v526_v50 = vpop.xlane.xlu0 %525 }
 0x23d   :  { %v549_v6 = vadd.f32 %v547_v49, %v526_v50 }
 0x23f   :  { %558 = vst.msk [vmem:[%s994_s7 + $0x8] sm:$0xff] %vm556_vm1, %v549_v6 }
 0x240   :  { %v529_v59 = vpop.xlane.xlu1 %528 }
 0x241   :  { %v550_v60 = vadd.f32 %v547_v49, %v529_v59 }
 0x243   :  { %559 = vst.msk [vmem:[%s994_s7 + $0x10] sm:$0xff] %vm556_vm1, %v550_v60 }
 0x244   :  { %v532_v52 = vpop.xlane.xlu1 %531 }
 0x245   :  { %v551_v7 = vadd.f32 %v547_v49, %v532_v52 }
 0x247   :  { %560 = vst.msk [vmem:[%s994_s7 + $0x18] sm:$0xff] %vm556_vm1, %v551_v7 }
 0x248   :  { %v535_v8 = vpop.xlane.xlu0 %534 }
 0x249   :  { %v552_v51 = vadd.f32 %v547_v49, %v535_v8 }
 0x24b   :  { %561 = vst.msk [vmem:[%s994_s7 + $0x20] sm:$0xff] %vm556_vm1, %v552_v51 }
 0x24c   :  { %v538_v9 = vpop.xlane.xlu1 %537 }
 0x24d   :  { %v553_v10 = vadd.f32 %v547_v49, %v538_v9 }
 0x24f   :  { %562 = vst.msk [vmem:[%s994_s7 + $0x28] sm:$0xff] %vm556_vm1, %v553_v10 }
 0x250   :  { %v541_v11 = vpop.xlane.xlu0 %540 }
 0x251   :  { %v554_v12 = vadd.f32 %v547_v49, %v541_v11 }
 0x253   :  { %563 = vst.msk [vmem:[%s994_s7 + $0x30] sm:$0xff] %vm556_vm1, %v554_v12 }
 0x254   :  { %v544_v13 = vpop.xlane.xlu1 %543 }
 0x255   :  { %v555_v14 = vadd.f32 %v547_v49, %v544_v13 }
 0x257   :  { %564 = vst.msk [vmem:[%s994_s7 + $0x38] sm:$0xff] %vm556_vm1, %v555_v14 }
 0x258   :  { %569 = vsyncpa [#allocation4], 1 }

</bundles_post_ra>
